<compile_context>
chip_gen: v7x
topology: tpu7x:2x2x1
jax: 0.10.0
libtpu: 0.0.40
codegen_flags: <defaults>
</compile_context>

<pallas_src>
import math
from functools import partial

import jax
import jax.numpy as jnp
import numpy as np
from jax import lax
from jax.experimental import pallas as pl
from jax.experimental.pallas import tpu as pltpu

_VMEM_LIMIT = 32 * 1024 * 1024


# ---------------------------------------------------------------------------
# helpers
# ---------------------------------------------------------------------------
def _round_up(n, m):
    return (n + m - 1) // m * m


def _tile(n, pref, mult):
    """Tile size <= pref (a multiple of `mult`); caller pads n to a multiple."""
    return pref if n >= pref else _round_up(n, mult)


def _pad_axis(a, axis, size):
    pad = size - a.shape[axis]
    if pad == 0:
        return a
    widths = [(0, 0)] * a.ndim
    widths[axis] = (0, pad)
    return jnp.pad(a, widths)


def _pick_ltile(L, pref):
    """Largest divisor of L that is <= pref and a multiple of 8 (or L)."""
    if L <= pref:
        return L
    if L % pref == 0:
        return pref
    for t in range(pref - pref % 8, 7, -8):
        if L % t == 0:
            return t
    # TODO(synk): masked epilogue tile for ragged L instead of a full-L tile.
    return L


def _su_rope_cos_sin(position_ids, head_dim, rope_theta, short_factor,
                     scaling_factor):
    """cos/sin tables of shape (L, head_dim), float32 (matches SuRoPE)."""
    exponents = jnp.arange(0, head_dim, 2, dtype=jnp.float32) / head_dim
    inv_freq = 1.0 / (short_factor * jnp.power(rope_theta, exponents))
    freqs = position_ids[:, None] * inv_freq[None, :]            # (L, hd/2)
    emb = jnp.concatenate([freqs, freqs], axis=-1)               # (L, hd)
    cos = (jnp.cos(emb) * scaling_factor).astype(jnp.float32)
    sin = (jnp.sin(emb) * scaling_factor).astype(jnp.float32)
    return cos, sin


def _decay_matrix(gamma, L):
    """(H, L, L) decay gamma**clamp(n-m, 0) -- reference only."""
    n = jnp.arange(L, dtype=jnp.float32)[:, None]
    m = jnp.arange(L, dtype=jnp.float32)[None, :]
    expo = jnp.maximum(n - m, 0.0)
    return gamma.astype(jnp.float32)[:, None, None] ** expo[None, :, :]


# ---------------------------------------------------------------------------
# Kernel 1: canonical tiled GEMM  y = x @ w_kn  (weight pre-transposed (K, N))
# ---------------------------------------------------------------------------
def _matmul_kernel(x_ref, w_ref, o_ref, acc_ref):
    @pl.when(pl.program_id(2) == 0)
    def _():
        acc_ref[...] = jnp.zeros_like(acc_ref)

    acc_ref[...] += jnp.dot(x_ref[...], w_ref[...],
                            preferred_element_type=jnp.float32)

    @pl.when(pl.program_id(2) == pl.num_programs(2) - 1)
    def _():
        o_ref[...] = acc_ref[...].astype(o_ref.dtype)


def matmul_kn(x, w_kn, *, tm_pref=256, tn_pref=256, tk_pref=512,
              out_dtype=None):
    M, K = x.shape
    K2, N = w_kn.shape
    assert K == K2
    out_dtype = out_dtype or x.dtype
    tm = _tile(M, tm_pref, 8)
    tn = _tile(N, tn_pref, 128)
    tk = _tile(K, tk_pref, 128)
    Mp, Np, Kp = _round_up(M, tm), _round_up(N, tn), _round_up(K, tk)
    x = _pad_axis(_pad_axis(x, 0, Mp), 1, Kp)
    w_kn = _pad_axis(_pad_axis(w_kn, 0, Kp), 1, Np)
    return pl.pallas_call(
        _matmul_kernel,
        out_shape=jax.ShapeDtypeStruct((Mp, Np), out_dtype),
        grid_spec=pltpu.PrefetchScalarGridSpec(
            num_scalar_prefetch=0,
            grid=(Mp // tm, Np // tn, Kp // tk),
            in_specs=[pl.BlockSpec((tm, tk), lambda i, j, k: (i, k)),
                      pl.BlockSpec((tk, tn), lambda i, j, k: (k, j))],
            out_specs=pl.BlockSpec((tm, tn), lambda i, j, k: (i, j)),
            scratch_shapes=[pltpu.VMEM((tm, tn), jnp.float32)],
        ),
        compiler_params=pltpu.CompilerParams(
            dimension_semantics=("parallel", "parallel", "arbitrary"),
            vmem_limit_bytes=_VMEM_LIMIT),
    )(x, w_kn)


# ---------------------------------------------------------------------------
# Kernel 2: SuRoPE + retention core, L-tiled, decay generated in-kernel.
# Reads q/k/v directly from the fused qkv activation (column block == head);
# writes output directly in (B, L, H*hd) channel layout.
# ---------------------------------------------------------------------------
def _retention_kernel(lgam_ref, q_ref, k_ref, v_ref, cq_ref, sq_ref,
                      ck_ref, sk_ref, o_ref, acc_ref, *,
                      half, tq, tkl, mxu_dtype):
    h, qi, ki = pl.program_id(1), pl.program_id(2), pl.program_id(3)

    @pl.when(ki == 0)
    def _():
        acc_ref[...] = jnp.zeros_like(acc_ref)

    # SuRoPE on the resident tiles.  `scale` is pre-folded into the q tables;
    # rotate_half(x) == roll(x, hd/2) with a pre-signed sin table (XLU op).
    q = q_ref[...].astype(jnp.float32)                            # (tq, hd)
    k = k_ref[...].astype(jnp.float32)                            # (tkl, hd)
    q = q * cq_ref[...] + pltpu.roll(q, shift=half, axis=1) * sq_ref[...]
    k = k * ck_ref[...] + pltpu.roll(k, shift=half, axis=1) * sk_ref[...]

    # scores: contract head_dim of q and k (no transpose materialized).
    s = lax.dot_general(q.astype(mxu_dtype), k.astype(mxu_dtype),
                        dimension_numbers=(((1,), (1,)), ((), ())),
                        preferred_element_type=jnp.float32)       # (tq, tkl)

    # Retention decay generated in-kernel from the per-head SMEM scalar:
    #   decay = gamma ** max(n - m, 0) = exp(log(gamma) * max(n - m, 0))
    n = qi * tq + lax.broadcasted_iota(jnp.int32, (tq, tkl), 0)
    m = ki * tkl + lax.broadcasted_iota(jnp.int32, (tq, tkl), 1)
    dec = jnp.exp(lgam_ref[h] * jnp.maximum(n - m, 0).astype(jnp.float32))

    w = (s * dec).astype(mxu_dtype)
    acc_ref[...] += jnp.dot(w, v_ref[...].astype(mxu_dtype),
                            preferred_element_type=jnp.float32)   # (tq, hd)

    @pl.when(ki == pl.num_programs(3) - 1)
    def _():
        o_ref[...] = acc_ref[...].astype(o_ref.dtype)


def retention_core(qkv, cos_q, sinr_q, cos_k, sinr_k, log_gamma, *,
                   B, L, H, Hkv, hd, out_dtype, mxu_dtype,
                   tq_pref=256, tkl_pref=256):
    assert L % 8 == 0, "TODO(synk): pad/mask L that is not a multiple of 8"
    assert H % Hkv == 0
    tq = _pick_ltile(L, tq_pref)
    tkl = _pick_ltile(L, tkl_pref)
    nq, nk = L // tq, L // tkl
    kv_rep = H // Hkv
    kernel = partial(_retention_kernel, half=hd // 2, tq=tq, tkl=tkl,
                     mxu_dtype=mxu_dtype)

    # q/k/v blocks are read straight out of the (M, op_size) qkv activation:
    # row block selects (batch, L-tile); column block selects the head
    # (GQA sharing via h // kv_rep; no broadcast materialized).
    def q_map(b, h, qi, ki, lg):  return (b * nq + qi, h)
    def k_map(b, h, qi, ki, lg):  return (b * nk + ki, H + h // kv_rep)
    def v_map(b, h, qi, ki, lg):  return (b * nk + ki, H + Hkv + h // kv_rep)
    def cq_map(b, h, qi, ki, lg): return (qi, 0)
    def ck_map(b, h, qi, ki, lg): return (ki, 0)
    # Output written directly in (B, L, H*hd) channel layout so kernel 3 needs
    # no activation transpose at all.
    def o_map(b, h, qi, ki, lg):  return (b, qi, h)

    return pl.pallas_call(
        kernel,
        out_shape=jax.ShapeDtypeStruct((B, L, H * hd), out_dtype),
        grid_spec=pltpu.PrefetchScalarGridSpec(
            num_scalar_prefetch=1,
            grid=(B, H, nq, nk),
            in_specs=[pl.BlockSpec((tq, hd), q_map),
                      pl.BlockSpec((tkl, hd), k_map),
                      pl.BlockSpec((tkl, hd), v_map),
                      pl.BlockSpec((tq, hd), cq_map),
                      pl.BlockSpec((tq, hd), cq_map),
                      pl.BlockSpec((tkl, hd), ck_map),
                      pl.BlockSpec((tkl, hd), ck_map)],
            out_specs=pl.BlockSpec((None, tq, hd), o_map),
            scratch_shapes=[pltpu.VMEM((tq, hd), jnp.float32)],
        ),
        compiler_params=pltpu.CompilerParams(
            dimension_semantics=("parallel", "parallel", "parallel",
                                 "arbitrary"),
            vmem_limit_bytes=_VMEM_LIMIT),
    )(log_gamma, qkv, qkv, qkv, cos_q, sinr_q, cos_k, sinr_k)


# ---------------------------------------------------------------------------
# Kernel 3: GroupNorm (affine=False) fused into o_proj, full C resident.
# Group statistics via tiny constant gather/scatter matmuls (groups are
# gs-contiguous lane segments); the normalized tile is cached in VMEM at the
# first N step and reused for every N tile (full-depth MXU contraction).
# ---------------------------------------------------------------------------
def _gn_oproj_kernel(o_ref, sg_ref, ss_ref, w_ref, out_ref, normed_ref, *, eps):
    @pl.when(pl.program_id(1) == 0)
    def _():
        x = o_ref[...].astype(jnp.float32)                       # (tm, C)
        mean_g = jnp.dot(x, sg_ref[...],
                         preferred_element_type=jnp.float32)     # (tm, G)
        ctr = x - jnp.dot(mean_g, ss_ref[...],
                          preferred_element_type=jnp.float32)    # (tm, C)
        var_g = jnp.dot(ctr * ctr, sg_ref[...],
                        preferred_element_type=jnp.float32)      # biased var
        rstd = jnp.dot(lax.rsqrt(var_g + eps), ss_ref[...],
                       preferred_element_type=jnp.float32)       # (tm, C)
        normed_ref[...] = (ctr * rstd).astype(normed_ref.dtype)

    out_ref[...] = jnp.dot(normed_ref[...], w_ref[...],
                           preferred_element_type=jnp.float32
                           ).astype(out_ref.dtype)


def groupnorm_oproj(o, w_kn, sg, ss, *, eps, out_dtype, mxu_dtype,
                    tm_pref=256, tn_pref=256):
    M, C = o.shape
    C2, N = w_kn.shape
    assert C == C2
    G = sg.shape[1]
    tm = _tile(M, tm_pref, 8)
    tn = _tile(N, tn_pref, 128)
    Mp, Np = _round_up(M, tm), _round_up(N, tn)
    o = _pad_axis(o, 0, Mp)
    w_kn = _pad_axis(w_kn, 1, Np)
    out = pl.pallas_call(
        partial(_gn_oproj_kernel, eps=float(eps)),
        out_shape=jax.ShapeDtypeStruct((Mp, Np), out_dtype),
        grid_spec=pltpu.PrefetchScalarGridSpec(
            num_scalar_prefetch=0,
            grid=(Mp // tm, Np // tn),
            in_specs=[pl.BlockSpec((tm, C), lambda i, j: (i, 0)),
                      pl.BlockSpec((C, G), lambda i, j: (0, 0)),
                      pl.BlockSpec((G, C), lambda i, j: (0, 0)),
                      pl.BlockSpec((C, tn), lambda i, j: (0, j))],
            out_specs=pl.BlockSpec((tm, tn), lambda i, j: (i, j)),
            scratch_shapes=[pltpu.VMEM((tm, C), mxu_dtype)],
        ),
        compiler_params=pltpu.CompilerParams(
            # N axis "arbitrary" so the normed-cache (filled at j == 0) is
            # valid on every core; the big M axis is the megacore-parallel one.
            dimension_semantics=("parallel", "arbitrary"),
            vmem_limit_bytes=_VMEM_LIMIT),
    )(o, sg, ss, w_kn)
    return out[:M, :N]


# ---------------------------------------------------------------------------
# Full Phi3Retention forward (use_recurrent_mode=False path)
# ---------------------------------------------------------------------------
def phi3_retention_forward(x, w_qkv, w_o, gamma, short_factor, *,
                           n_heads, n_kv_heads, head_dim, rope_theta,
                           original_max_position_embeddings,
                           max_position_embeddings, position_ids=None):
    B, L, dim = x.shape
    H, Hkv, hd = n_heads, n_kv_heads, head_dim
    C = H * hd
    scale = hd ** (-0.5)
    mxu_dtype = jnp.bfloat16 if x.dtype == jnp.bfloat16 else jnp.float32

    # ---- x-independent precompute (in a real model: done once at load) -----
    w_qkv_kn = jnp.asarray(w_qkv).T                      # (dim, op_size)
    w_o_kn = jnp.asarray(w_o).T                          # (C, dim)
    if position_ids is None:
        position_ids = jnp.arange(L, dtype=jnp.float32)
    scaling_factor = math.sqrt(
        1.0 + math.log(max_position_embeddings /
                       original_max_position_embeddings)
        / math.log(original_max_position_embeddings))
    cos, sin = _su_rope_cos_sin(position_ids, hd, rope_theta, short_factor,
                                scaling_factor)
    sinr = jnp.concatenate([-sin[:, :hd // 2], sin[:, hd // 2:]], axis=-1)
    cos_q, sinr_q = cos * scale, sinr * scale            # fold q-scale in
    log_gamma = jnp.log(gamma.astype(jnp.float32))       # (H,) SMEM scalars
    gs = C // hd                                         # group size (=H)
    grp = jnp.arange(C, dtype=jnp.int32) // gs
    onehot = (grp[:, None] == jnp.arange(hd, dtype=jnp.int32)[None, :]
              ).astype(jnp.float32)                      # (C, G)
    sg = onehot / gs                                     # gather (mean)
    ss = onehot.T                                        # scatter (broadcast)

    # ---- kernel 1: fused qkv projection -------------------------------------
    qkv = matmul_kn(x.reshape(B * L, dim), w_qkv_kn)     # (M[, padded], op)

    # ---- kernel 2: SuRoPE + retention (L-tiled, in-kernel decay) ------------
    o = retention_core(qkv, cos_q, sinr_q, cos, sinr, log_gamma,
                       B=B, L=L, H=H, Hkv=Hkv, hd=hd,
                       out_dtype=x.dtype, mxu_dtype=mxu_dtype)   # (B, L, C)

    # ---- kernel 3: GroupNorm (num_groups=head_dim) fused with o_proj --------
    out = groupnorm_oproj(o.reshape(B * L, C), w_o_kn, sg, ss, eps=1e-5,
                          out_dtype=x.dtype, mxu_dtype=mxu_dtype)  # (B*L, dim)
    return out.reshape(B, L, dim), None    # cache is always None in this path


# ---------------------------------------------------------------------------
# Pure-JAX reference mirroring the PyTorch module
# ---------------------------------------------------------------------------
def _rotate_half(t):
    half = t.shape[-1] // 2
    return jnp.concatenate([-t[..., half:], t[..., :half]], axis=-1)


def phi3_retention_ref(x, w_qkv, w_o, gamma, short_factor, *,
                       n_heads, n_kv_heads, head_dim, rope_theta,
                       original_max_position_embeddings,
                       max_position_embeddings):
    B, L, dim = x.shape
    H, Hkv, hd = n_heads, n_kv_heads, head_dim
    qkv = x.reshape(B * L, dim) @ w_qkv.T
    c1, c2 = H * hd, H * hd + Hkv * hd
    q = qkv[:, :c1].reshape(B, L, H, hd).transpose(0, 2, 1, 3)
    k = qkv[:, c1:c2].reshape(B, L, Hkv, hd).transpose(0, 2, 1, 3)
    v = qkv[:, c2:].reshape(B, L, Hkv, hd).transpose(0, 2, 1, 3)

    pos = jnp.arange(L, dtype=jnp.float32)
    scaling_factor = math.sqrt(
        1.0 + math.log(max_position_embeddings /
                       original_max_position_embeddings)
        / math.log(original_max_position_embeddings))
    cos, sin = _su_rope_cos_sin(pos, hd, rope_theta, short_factor,
                                scaling_factor)
    q = q * cos + _rotate_half(q) * sin
    k = k * cos + _rotate_half(k) * sin

    scale = hd ** (-0.5)
    w = jnp.einsum('bhld,bhmd->bhlm', q * scale, k)
    w = w * _decay_matrix(gamma, L)[None]
    o = jnp.einsum('bhlm,bhmd->bhld', w, v)
    o = o.transpose(0, 2, 1, 3).reshape(B * L, H * hd)

    G, gs = hd, (H * hd) // hd
    og = o.reshape(B * L, G, gs)
    mean = og.mean(-1, keepdims=True)
    var = ((og - mean) ** 2).mean(-1, keepdims=True)
    on = ((og - mean) / jnp.sqrt(var + 1e-5)).reshape(B * L, H * hd)
    out = on @ w_o.T
    return out.reshape(B, L, dim).astype(x.dtype)


# ---------------------------------------------------------------------------
if __name__ == "__main__":
    # Small config consistent with the module's forward.
    B, L = 2, 8
    n_heads = 4
    n_kv_heads = 4
    head_dim = 128
    dim = n_heads * head_dim                       # hidden_size = 512
    op_size = n_heads * head_dim + 2 * n_kv_heads * head_dim
    rope_theta = 10000.0
    original_max_position_embeddings = 32
    max_position_embeddings = 64

    key = jax.random.PRNGKey(0)
    kx, kq, ko = jax.random.split(key, 3)
    x = jax.random.normal(kx, (B, L, dim), dtype=jnp.float32)
    w_qkv = jax.random.normal(kq, (op_size, dim), dtype=jnp.float32) / math.sqrt(dim)
    w_o = jax.random.normal(ko, (dim, n_heads * head_dim),
                            dtype=jnp.float32) / math.sqrt(n_heads * head_dim)

    # gamma buffer exactly as in __init__
    xs = jnp.linspace(math.log(1 / 32), math.log(1 / 512), n_heads)
    gamma = (1.0 - jnp.exp(xs)).astype(jnp.float32)
    # rope_scaling['short_factor'] (deterministic, non-trivial)
    short_factor = 1.0 + 0.05 * jnp.arange(head_dim // 2, dtype=jnp.float32)

    kwargs = dict(n_heads=n_heads, n_kv_heads=n_kv_heads, head_dim=head_dim,
                  rope_theta=rope_theta,
                  original_max_position_embeddings=original_max_position_embeddings,
                  max_position_embeddings=max_position_embeddings)

    out, cache = phi3_retention_forward(x, w_qkv, w_o, gamma, short_factor,
                                        **kwargs)
    out = jax.block_until_ready(out)

    ref = phi3_retention_ref(x, w_qkv, w_o, gamma, short_factor, **kwargs)
    ref = jax.block_until_ready(ref)

    np.testing.assert_allclose(np.asarray(out), np.asarray(ref),
                               rtol=2e-4, atol=2e-4)
    print("KERNEL_OK")
</pallas_src>

<mosaic_0001>
module attributes {stable_mosaic.version = 11 : i64} {
  func.func @_matmul_kernel(%arg0: i32, %arg1: i32, %arg2: i32, %arg3: memref<16x512xf32, #tpu.memory_space<vmem>>, %arg4: memref<512x256xf32, #tpu.memory_space<vmem>>, %arg5: memref<16x256xf32, #tpu.memory_space<vmem>>, %arg6: memref<16x256xf32, #tpu.memory_space<vmem>>) attributes {dimension_semantics = [#tpu.dimension_semantics<parallel>, #tpu.dimension_semantics<parallel>, #tpu.dimension_semantics<arbitrary>], iteration_bounds = array<i64: 1, 6, 1>, scalar_prefetch = 0 : i64, scratch_operands = 1 : i64, tpu.core_type = #tpu.core_type<tc>, window_params = [{transform_indices = @transform_0, window_bounds = array<i64: 16, 512>}, {transform_indices = @transform_1, window_bounds = array<i64: 512, 256>}, {transform_indices = @transform_2, window_bounds = array<i64: 16, 256>}]} {
    %c0_i32 = arith.constant 0 : i32
    %0 = arith.cmpi eq, %arg2, %c0_i32 : i32
    %1 = arith.extui %0 : i1 to i32
    %c0_i32_0 = arith.constant 0 : i32
    %2 = arith.cmpi ne, %1, %c0_i32_0 : i32
    scf.if %2 {
      %cst_10 = arith.constant 0.000000e+00 : f32
      %12 = vector.broadcast %cst_10 : f32 to vector<16x256xf32>
      %c0_11 = arith.constant 0 : index
      %c0_12 = arith.constant 0 : index
      %13 = vector.load %arg6[%c0_11, %c0_12] : memref<16x256xf32, #tpu.memory_space<vmem>>, vector<16x256xf32>
      tpu.vector_store %arg6[%c0_11, %c0_12], %12 {strides = array<i32>} : memref<16x256xf32, #tpu.memory_space<vmem>>, vector<16x256xf32>,
    } else {
    }
    %c0 = arith.constant 0 : index
    %c0_1 = arith.constant 0 : index
    %3 = vector.load %arg6[%c0, %c0_1] : memref<16x256xf32, #tpu.memory_space<vmem>>, vector<16x256xf32>
    %c0_2 = arith.constant 0 : index
    %c0_3 = arith.constant 0 : index
    %4 = vector.load %arg3[%c0_2, %c0_3] : memref<16x512xf32, #tpu.memory_space<vmem>>, vector<16x512xf32>
    %c0_4 = arith.constant 0 : index
    %c0_5 = arith.constant 0 : index
    %5 = vector.load %arg4[%c0_4, %c0_5] : memref<512x256xf32, #tpu.memory_space<vmem>>, vector<512x256xf32>
    %cst = arith.constant dense<0.000000e+00> : vector<16x256xf32>
    %6 = tpu.matmul %4, %5, %cst {dimension_numbers = #tpu.dot_dimension_numbers<[1], [0], [0], [1], [0, 0, 1, 1], [], []>} : vector<16x512xf32>, vector<512x256xf32>, vector<16x256xf32> -> vector<16x256xf32>
    %7 = arith.addf %3, %6 : vector<16x256xf32>
    %c0_6 = arith.constant 0 : index
    %c0_7 = arith.constant 0 : index
    %8 = vector.load %arg6[%c0_6, %c0_7] : memref<16x256xf32, #tpu.memory_space<vmem>>, vector<16x256xf32>
    tpu.vector_store %arg6[%c0_6, %c0_7], %7 {strides = array<i32>} : memref<16x256xf32, #tpu.memory_space<vmem>>, vector<16x256xf32>,
    %c0_i32_8 = arith.constant 0 : i32
    %9 = arith.cmpi eq, %arg2, %c0_i32_8 : i32
    %10 = arith.extui %9 : i1 to i32
    %c0_i32_9 = arith.constant 0 : i32
    %11 = arith.cmpi ne, %10, %c0_i32_9 : i32
    scf.if %11 {
      %c0_10 = arith.constant 0 : index
      %c0_11 = arith.constant 0 : index
      %12 = vector.load %arg6[%c0_10, %c0_11] : memref<16x256xf32, #tpu.memory_space<vmem>>, vector<16x256xf32>
      %c0_12 = arith.constant 0 : index
      %c0_13 = arith.constant 0 : index
      %13 = vector.load %arg5[%c0_12, %c0_13] : memref<16x256xf32, #tpu.memory_space<vmem>>, vector<16x256xf32>
      tpu.vector_store %arg5[%c0_12, %c0_13], %12 {strides = array<i32>} : memref<16x256xf32, #tpu.memory_space<vmem>>, vector<16x256xf32>,
    } else {
    }
    return
  }
  func.func @transform_0(%arg0: i32, %arg1: i32, %arg2: i32) -> (i32, i32) {
    %c0_i32 = arith.constant 0 : i32
    return %arg0, %arg2 : i32, i32
  }
  func.func @transform_1(%arg0: i32, %arg1: i32, %arg2: i32) -> (i32, i32) {
    %c0_i32 = arith.constant 0 : i32
    return %arg2, %arg1 : i32, i32
  }
  func.func @transform_2(%arg0: i32, %arg1: i32, %arg2: i32) -> (i32, i32) {
    %c0_i32 = arith.constant 0 : i32
    return %arg0, %arg1 : i32, i32
  }
}

</mosaic_0001>

<bundles_post_ra>
// kernel: tpu_custom_call.1
= control target key start
LH: loop header
LB: loop body
LE: loop exit
PB: predicated region body
PF: predicated region fallthrough
CT: control target
= control target key end

     0   :  { %7 = vsyncpa [#allocation4], 0  ;;  %s1413_s0 = inlined_call_operand.hbm [shape: f32[16,512], index: 0, kind: input, shape index: {}]   ;;  %s1414_s1 = inlined_call_operand.hbm [shape: f32[512,1536], index: 1, kind: input, shape index: {}]   ;;  %s1415_s2 = inlined_call_operand.hbm [shape: f32[16,1536], index: 2, kind: output, shape index: {}]  }
   0x1   :  { %8 = vsyncpa [#allocation7], 0 }
   0x2   :  { %10 = vsyncpa [#allocation7 + $0x1], 0 }
   0x3   :  { %11 = vsyncpa [#allocation5], 0 }
   0x4   :  { %13 = vsyncpa [#allocation5 + $0x1], 0  ;;  %s1071_s9 = smov 0   ;;  %s1073_s10 = smov 0  }
   0x5   :  { %s1075_s11 = smov 0   ;;  %s1077_s12 = smov 0  }
   0x6   :  { %s1079_s13 = smov 0   ;;  %s1081_s14 = smov 0  }
   0x7 LB: > { %s667_s15 = sadd.s32 4294967295, %s1043_s14   ;;  %s668_s16 = sadd.s32 4294967294, %s1043_s14   ;;  %s1043_s14 = sphi %s1081_s14, %s19_s14   ;;  %s1039_s13 = sphi %s1079_s13, %s1440_s13   ;;  %s1035_s12 = sphi %s1077_s12, %s1439_s12   ;;  %s1031_s11 = sphi %s1075_s11, %s1438_s11   ;;  %s1027_s10 = sphi %s1073_s10, %s1437_s10   ;;  %s1023_s9 = sphi %s1071_s9, %s1436_s9  }
   0x8   : > { %p82_p0 = scmp.ne.s32.totalorder %s1031_s11, %s1027_s10  ;;  %p83_p1 = scmp.eq.s32.totalorder %s1043_s14, 0 }
   0x9   : > { %p88_p2 = scmp.ne.s32.totalorder %s1027_s10, %s1023_s9  ;;  %p1108_p3 = scmp.eq.s32.totalorder %s667_s15, 0 }
   0xa   : > { %p1112_p4 = por %p83_p1, %p82_p0  ;;  %p114_p5 = scmp.eq.s32.totalorder %s667_s15, 5 }
   0xb   : > { %s1422_s17 = scalar_select %p1108_p3, 1, 0 }
   0xc   : > { %p1118_p6 = por %p1108_p3, %p88_p2  ;;  %p120_p7 = scmp.eq.s32.totalorder %s668_s16, 5 }
   0xd   : > { %p1122_p8 = por %p114_p5, %p82_p0  ;;  %p669_p9 = scmp.ge.s32.totalorder %s1043_s14, 1 }
   0xe   : > { %s1424_s19 = scalar_select %p1118_p6, 1, 0 }
   0xf   : > { %s1425_s20 = scalar_select %p1122_p8, 1, 0 }
  0x10   : > { %p1127_p10 = por %p120_p7, %p88_p2  ;;  %p127_p11 = scmp.lt.s32.totalorder %s1043_s14, 7 }
  0x11   : > { %s1045_s23 = smov [#allocation3]   ;;  %p839_p0 = scmp.lt.s32.totalorder %s1043_s14, 6 }
  0x12   : > { %s1426_s21 = scalar_select %p1127_p10, 1, 0 }
  0x13   : > { %p1132_p12 = pnand %p669_p9, %p127_p11  ;;  %s145_s24 = sshll.u32 %s1045_s23, 4  ;;  %s146_s24 = int_to_ptr.vmem [resolvable:$true] %s145_s24 }
  0x14   : > { %p1147_p2 = pnand %p839_p0, %p1112_p4  ;;  %s34_s27 = sadd.s32 1, %s1039_s13 }
  0x15   : > { %s1427_s22 = scalar_select %p1132_p12, 1, 0 }
  0x16   : > { %p826_p13 = pneg %p1132_p12  ;;  %s899_s30 = scalar_lea.hbm %s1413_s0, 1024 }
  0x17   : > { %s1429_s26 = scalar_select %p1147_p2, 1, 0 }
  0x18   : > { %p1141_p1 = pnand %p826_p13, %p1108_p3  ;;  %p900_p5 = scmp.ne.s32.totalorder %s1413_s0, %s899_s30 }
  0x19   : > { %p906_p4 = scmp.lt.u32.totalorder %s899_s30, %s1413_s0 }
  0x1a   : > { %p901_p7 = pneg %p1141_p1 }
  0x1c   : > { %p902_p9 = pnand %p901_p7, %p900_p5 }
  0x1e   : > { %p903_p11 = pneg %p902_p9 }
  0x20   : > { %p908_p13 = pnand %p906_p4, %p903_p11 }
  0x22   : > { %911 = shalt.err (!%p908_p13)
}
  0x23   : > { %s912_s7 = scalar_lea.vmem %s146_s24, 1024  ;;  %p920_p6 = scmp.lt.s32.totalorder %s146_s24, %s146_s24 }
  0x24   : > { %p913_p0 = scmp.ne.s32.totalorder %s146_s24, %s912_s7  ;;  %p921_p3 = scmp.lt.s32.totalorder %s912_s7, %s912_s7 }
  0x26   : > { %p915_p10 = pnand %p913_p0, %p901_p7  ;;  %p922_p12 = por %p921_p3, %p920_p6 }
  0x28   : > { %p916_p8 = pneg %p915_p10 }
  0x2a   : > { %p923_p2 = pnand %p922_p12, %p916_p8 }
  0x2c   : > { %926 = shalt.err (!%p923_p2)
}
  0x2d   : > { %s1046_s8 = smov 512   ;;  %s1047_s15 = smov 32  }
  0x2e   : > { %829 = dma.hbm_to_vmem [thread:$0]  (!%p1141_p1), %s1413_s0, 1024, %s146_s24, [#allocation4], %s1046_s8, %s1046_s8, %s1047_s15  }
  0x2f   : > { %p36_p5 = scmp.ge.s32.totalorder %s34_s27, 6  ;;  %s75_s23 = sadd.s32 1, %s1031_s11 }
  0x30   : > { %s159_s28 = sand.u32 1, %s1031_s11   ;;  %s684_s3 = sshll.u32 %s1039_s13, 8 }
  0x31   : > { %s1442_s27 = smov (%p36_p5, %s34_s27), 0  ;;  %s672_s29 = sshll.u32 %s159_s28, 10 }
  0x32   : > { %s71_s30 = ssub.s32 %s1039_s13, %s1442_s27  ;;  %s1178_s25 = scalar_lea.hbm %s1414_s1, %s684_s3 }
  0x33   : > { %p73_p3 = scmp.eq.s32.totalorder %s71_s30, 0  ;;  %s163_s24 = scalar_lea.vmem [#allocation6], %s672_s29 }
  0x34   : > { %s173_s6 = sshll.u32 %s163_s24, 4  ;;  %s1185_s8 = scalar_lea.sflag [#allocation7], %s159_s28  ;;  %s1183_s6 = int_to_ptr.vmem [resolvable:$true] %s173_s6 }
  0x35   : > { %s1181_s7 = scalar_select %p73_p3, %s1031_s11, %s75_s23  }
  0x36   : > { %s927_s15 = scalar_lea.hbm %s1178_s25, 16384  ;;  %p1430_p8 = scmp.ne.s32.totalorder %s1429_s26, 0 }
  0x37   : > { %p928_p6 = scmp.ne.s32.totalorder %s1178_s25, %s927_s15  ;;  %s932_s30 = scalar_lea.hbm %s1414_s1, 98304 }
  0x38   : > { %p929_p10 = pneg %p1430_p8  ;;  %p933_p2 = scmp.lt.u32.totalorder %s1178_s25, %s1414_s1 }
  0x39   : > { %p934_p7 = scmp.lt.u32.totalorder %s932_s30, %s927_s15  ;;  %p936_p11 = scmp.lt.u32.totalorder %s927_s15, %s1178_s25 }
  0x3a   : > { %p930_p12 = pnand %p929_p10, %p928_p6 }
  0x3b   : > { %p935_p9 = por %p934_p7, %p933_p2 }
  0x3c   : > { %p931_p1 = pneg %p930_p12 }
  0x3d   : > { %p937_p4 = por %p936_p11, %p935_p9 }
  0x3f   : > { %p938_p13 = pnand %p937_p4, %p931_p1 }
  0x41   : > { %941 = shalt.err (!%p938_p13)
}
  0x42   : > { %s942_s23 = scalar_lea.vmem %s1183_s6, 16384  ;;  %s1048_s28 = smov [#allocation6]  }
  0x43   : > { %p943_p0 = scmp.ne.s32.totalorder %s1183_s6, %s942_s23  ;;  %s947_s4 = sshll.u32 %s1048_s28, 4  ;;  %s948_s4 = int_to_ptr.vmem [resolvable:$false] %s947_s4 }
  0x44   : > { %s949_s5 = scalar_lea.vmem %s948_s4, 32768  ;;  %p950_p6 = scmp.lt.s32.totalorder %s1183_s6, %s948_s4 }
  0x45   : > { %p945_p5 = pnand %p943_p0, %p929_p10  ;;  %p951_p12 = scmp.lt.s32.totalorder %s949_s5, %s942_s23 }
  0x47   : > { %p946_p3 = pneg %p945_p5  ;;  %p952_p2 = por %p951_p12, %p950_p6 }
  0x49   : > { %p953_p7 = pnand %p952_p2, %p946_p3 }
  0x4b   : > { %956 = shalt.err (!%p953_p7)
}
  0x4c   : > { %s1049_s24 = smov 1536   ;;  %s1050_s15 = smov 256  }
  0x4d   : > { %s1051_s16 = smov 16   ;;  %p1431_p10 = scmp.ne.s32.totalorder %s1427_s22, 0 }
  0x4e   : > { %833 = dma.hbm_to_vmem [thread:$0]  (!%p1430_p8), %s1178_s25, 16384, %s1183_s6, %s1185_s8, %s1049_s24, %s1050_s15, %s1051_s16  }
  0x4f   : > { %185 = sbr.rel (%p1431_p10) target bundleno = 395 (0x18b), region = 28  ;;  %p1432_p1 = scmp.ne.s32.totalorder (!%p1431_p10), %s1422_s17, 0 }
  0x56   : > { %1010 = dma.done.wait (%p1432_p1), [#allocation4], 1024  }
  0x57   : > { %1012 = vsyncadd (%p1432_p1), [#allocation4], 4294966272  ;;  %s1220_s18 = sand.u32 1, %s1027_s10   ;;  %p1433_p8 = scmp.ne.s32.totalorder %s1424_s19, 0 }
  0x58   : > { %s677_s30 = sshll.u32 %s1220_s18, 10  ;;  %s192_s29 = scalar_lea.sflag [#allocation7], %s1220_s18 }
  0x59   : > { %s1224_s3 = scalar_lea.vmem [#allocation6], %s677_s30 }
  0x5a   : > { %1014 = dma.done.wait (%p1433_p8), %s192_s29, 16384  }
  0x5b   : > { %1016 = vsyncadd (%p1433_p8), %s192_s29, 4294950912  ;;  %v243_v0 = vld [vmem:[%s1224_s3 + $0x8] sm:$0xff]  ;;  %v245_v1 = vld [vmem:[%s1224_s3 + $0x18] sm:$0xff]  ;;  %s678_s17 = sshll.u32 %s1220_s18, 5  ;;  %s685_s26 = sshll.u32 %s1035_s12, 8 }
  0x5c   : > { %v307_v2 = vld [vmem:[%s1224_s3 + $0x208] sm:$0xff]  ;;  %v686_v3 = vpack.c.bf16 %v245_v1, %v243_v0  ;;  %v309_v4 = vld [vmem:[%s1224_s3 + $0x218] sm:$0xff]  ;;  %v242_v5 = vld [vmem:[%s1224_s3] sm:$0xff]  ;;  %s215_s19 = scalar_lea.vmem [#allocation8], %s678_s17  ;;  %s1365_s8 = scalar_lea.hbm %s1415_s2, %s685_s26 }
  0x5d   : > { %v244_v6 = vld [vmem:[%s1224_s3 + $0x10] sm:$0xff]  ;;  %v750_v7 = vpack.c.bf16 %v309_v4, %v307_v2  ;;  %v306_v9 = vld [vmem:[%s1224_s3 + $0x200] sm:$0xff]  ;;  %v247_v11 = vld [vmem:[%s1224_s3 + $0x28] sm:$0xff]  ;;  %s560_s22 = sshll.u32 %s215_s19, 4  ;;  %s544_s12 = scalar_lea.sflag [#allocation5], %s1220_s18  ;;  %s1360_s22 = int_to_ptr.vmem [resolvable:$true] %s560_s22 }
  0x5e   : > { %v688_v8 = vpack.c.bf16 %v244_v6, %v242_v5  ;;  %v308_v10 = vld [vmem:[%s1224_s3 + $0x210] sm:$0xff]  ;;  %687 = vmatprep.subr.bf16.mxu1 %v686_v3  ;;  %v249_v13 = vld [vmem:[%s1224_s3 + $0x38] sm:$0xff]  ;;  %v311_v14 = vld [vmem:[%s1224_s3 + $0x228] sm:$0xff]  ;;  %s957_s23 = scalar_lea.vmem %s1360_s22, 512  ;;  %p1434_p11 = scmp.ne.s32.totalorder %s1425_s20, 0 }
  0x5f   : > { %v752_v12 = vpack.c.bf16 %v308_v10, %v306_v9  ;;  %v313_v15 = vld [vmem:[%s1224_s3 + $0x238] sm:$0xff]  ;;  %751 = vmatprep.subr.bf16.mxu0 %v750_v7  ;;  %v690_v16 = vpack.c.bf16 %v249_v13, %v247_v11  ;;  %v246_v18 = vld [vmem:[%s1224_s3 + $0x20] sm:$0xff]  ;;  %v248_v19 = vld [vmem:[%s1224_s3 + $0x30] sm:$0xff]  ;;  %p958_p9 = scmp.ne.s32.totalorder %s1360_s22, %s957_s23  ;;  %s1052_s28 = smov [#allocation8]  }
  0x60   : > { %689 = vmatpush1.bf16.msra.mxu1 %v688_v8  ;;  %v754_v17 = vpack.c.bf16 %v313_v15, %v311_v14  ;;  %v310_v20 = vld [vmem:[%s1224_s3 + $0x220] sm:$0xff]  ;;  %v692_v21 = vpack.c.bf16 %v248_v19, %v246_v18  ;;  %v312_v22 = vld [vmem:[%s1224_s3 + $0x230] sm:$0xff]  ;;  %v251_v23 = vld [vmem:[%s1224_s3 + $0x48] sm:$0xff]  ;;  %s961_s4 = sshll.u32 %s1052_s28, 4  ;;  %s962_s4 = int_to_ptr.vmem [resolvable:$false] %s961_s4 }
  0x61   : > { %753 = vmatpush1.bf16.msra.mxu0 %v752_v12  ;;  %v253_v24 = vld [vmem:[%s1224_s3 + $0x58] sm:$0xff]  ;;  %691 = vmatprep.subr.bf16.mxu1 %v690_v16  ;;  %v756_v25 = vpack.c.bf16 %v312_v22, %v310_v20  ;;  %v315_v27 = vld [vmem:[%s1224_s3 + $0x248] sm:$0xff]  ;;  %v250_v29 = vld [vmem:[%s1224_s3 + $0x40] sm:$0xff]  ;;  %p959_p4 = pnand %p958_p9, %p1434_p11  ;;  %s963_s5 = scalar_lea.vmem %s962_s4, 1024 }
  0x62   : > { %755 = vmatprep.subr.bf16.mxu0 %v754_v17  ;;  %v694_v26 = vpack.c.bf16 %v253_v24, %v251_v23  ;;  %v317_v28 = vld [vmem:[%s1224_s3 + $0x258] sm:$0xff]  ;;  %v252_v31 = vld [vmem:[%s1224_s3 + $0x50] sm:$0xff]  ;;  %v314_v32 = vld [vmem:[%s1224_s3 + $0x240] sm:$0xff]  ;;  %p964_p0 = scmp.lt.s32.totalorder %s1360_s22, %s962_s4  ;;  %p965_p5 = scmp.lt.s32.totalorder %s963_s5, %s957_s23 }
  0x63   : > { %v758_v30 = vpack.c.bf16 %v317_v28, %v315_v27  ;;  %v316_v33 = vld [vmem:[%s1224_s3 + $0x250] sm:$0xff]  ;;  %v696_v34 = vpack.c.bf16 %v252_v31, %v250_v29  ;;  %v255_v35 = vld [vmem:[%s1224_s3 + $0x68] sm:$0xff]  ;;  %v257_v36 = vld [vmem:[%s1224_s3 + $0x78] sm:$0xff]  ;;  %p960_p13 = pneg %p959_p4 }
  0x64   : > { %693 = vmatpush1.bf16.msra.mxu1 %v692_v21  ;;  %v319_v37 = vld [vmem:[%s1224_s3 + $0x268] sm:$0xff]  ;;  %v760_v38 = vpack.c.bf16 %v316_v33, %v314_v32  ;;  %v698_v39 = vpack.c.bf16 %v257_v36, %v255_v35  ;;  %v321_v40 = vld [vmem:[%s1224_s3 + $0x278] sm:$0xff]  ;;  %v254_v41 = vld [vmem:[%s1224_s3 + $0x60] sm:$0xff]  ;;  %p966_p3 = por %p965_p5, %p964_p0 }
  0x65   : > { %757 = vmatpush1.bf16.msra.mxu0 %v756_v25  ;;  %695 = vmatprep.subr.bf16.mxu1 %v694_v26  ;;  %v256_v42 = vld [vmem:[%s1224_s3 + $0x70] sm:$0xff]  ;;  %v762_v43 = vpack.c.bf16 %v321_v40, %v319_v37  ;;  %v318_v44 = vld [vmem:[%s1224_s3 + $0x260] sm:$0xff]  ;;  %v259_v46 = vld [vmem:[%s1224_s3 + $0x88] sm:$0xff] }
  0x66   : > { %759 = vmatprep.subr.bf16.mxu0 %v758_v30  ;;  %v320_v45 = vld [vmem:[%s1224_s3 + $0x270] sm:$0xff]  ;;  %v261_v47 = vld [vmem:[%s1224_s3 + $0x98] sm:$0xff]  ;;  %v323_v48 = vld [vmem:[%s1224_s3 + $0x288] sm:$0xff]  ;;  %v700_v50 = vpack.c.bf16 %v256_v42, %v254_v41  ;;  %p967_p6 = pnand %p966_p3, %p960_p13 }
  0x67   : > { %v325_v49 = vld [vmem:[%s1224_s3 + $0x298] sm:$0xff]  ;;  %v764_v51 = vpack.c.bf16 %v320_v45, %v318_v44  ;;  %v702_v52 = vpack.c.bf16 %v261_v47, %v259_v46  ;;  %v258_v53 = vld [vmem:[%s1224_s3 + $0x80] sm:$0xff]  ;;  %v260_v54 = vld [vmem:[%s1224_s3 + $0x90] sm:$0xff] }
  0x68   : > { %697 = vmatpush1.bf16.msra.mxu1 %v696_v34  ;;  %v322_v55 = vld [vmem:[%s1224_s3 + $0x280] sm:$0xff]  ;;  %v766_v56 = vpack.c.bf16 %v325_v49, %v323_v48  ;;  %v324_v57 = vld [vmem:[%s1224_s3 + $0x290] sm:$0xff]  ;;  %v263_v58 = vld [vmem:[%s1224_s3 + $0xa8] sm:$0xff]  ;;  %v704_v62 = vpack.c.bf16 %v260_v54, %v258_v53 }
  0x69   : > { %761 = vmatpush1.bf16.msra.mxu0 %v760_v38  ;;  %699 = vmatprep.subr.bf16.mxu1 %v698_v39  ;;  %v265_v59 = vld [vmem:[%s1224_s3 + $0xb8] sm:$0xff]  ;;  %v327_v60 = vld [vmem:[%s1224_s3 + $0x2a8] sm:$0xff]  ;;  %v768_v63 = vpack.c.bf16 %v324_v57, %v322_v55  ;;  %v262_v1 = vld [vmem:[%s1224_s3 + $0xa0] sm:$0xff] }
  0x6a   : > { %763 = vmatprep.subr.bf16.mxu0 %v762_v43  ;;  %v329_v61 = vld [vmem:[%s1224_s3 + $0x2b8] sm:$0xff]  ;;  %v706_v0 = vpack.c.bf16 %v265_v59, %v263_v58  ;;  %v264_v2 = vld [vmem:[%s1224_s3 + $0xb0] sm:$0xff]  ;;  %v326_v3 = vld [vmem:[%s1224_s3 + $0x2a0] sm:$0xff] }
  0x6b   : > { %v770_v4 = vpack.c.bf16 %v329_v61, %v327_v60  ;;  %v328_v5 = vld [vmem:[%s1224_s3 + $0x2b0] sm:$0xff]  ;;  %v267_v6 = vld [vmem:[%s1224_s3 + $0xc8] sm:$0xff]  ;;  %v269_v7 = vld [vmem:[%s1224_s3 + $0xd8] sm:$0xff]  ;;  %v708_v10 = vpack.c.bf16 %v264_v2, %v262_v1 }
  0x6c   : > { %701 = vmatpush1.bf16.msra.mxu1 %v700_v50  ;;  %v331_v8 = vld [vmem:[%s1224_s3 + $0x2c8] sm:$0xff]  ;;  %v333_v9 = vld [vmem:[%s1224_s3 + $0x2d8] sm:$0xff]  ;;  %v772_v11 = vpack.c.bf16 %v328_v5, %v326_v3  ;;  %v710_v12 = vpack.c.bf16 %v269_v7, %v267_v6  ;;  %v266_v13 = vld [vmem:[%s1224_s3 + $0xc0] sm:$0xff] }
  0x6d   : > { %765 = vmatpush1.bf16.msra.mxu0 %v764_v51  ;;  %703 = vmatprep.subr.bf16.mxu1 %v702_v52  ;;  %v268_v14 = vld [vmem:[%s1224_s3 + $0xd0] sm:$0xff]  ;;  %v330_v15 = vld [vmem:[%s1224_s3 + $0x2c0] sm:$0xff]  ;;  %v774_v16 = vpack.c.bf16 %v333_v9, %v331_v8  ;;  %v271_v18 = vld [vmem:[%s1224_s3 + $0xe8] sm:$0xff] }
  0x6e   : > { %767 = vmatprep.subr.bf16.mxu0 %v766_v56  ;;  %v332_v17 = vld [vmem:[%s1224_s3 + $0x2d0] sm:$0xff]  ;;  %v273_v19 = vld [vmem:[%s1224_s3 + $0xf8] sm:$0xff]  ;;  %v335_v20 = vld [vmem:[%s1224_s3 + $0x2e8] sm:$0xff]  ;;  %v712_v22 = vpack.c.bf16 %v268_v14, %v266_v13 }
  0x6f   : > { %v337_v21 = vld [vmem:[%s1224_s3 + $0x2f8] sm:$0xff]  ;;  %v776_v23 = vpack.c.bf16 %v332_v17, %v330_v15  ;;  %v714_v24 = vpack.c.bf16 %v273_v19, %v271_v18  ;;  %v270_v25 = vld [vmem:[%s1224_s3 + $0xe0] sm:$0xff]  ;;  %v272_v26 = vld [vmem:[%s1224_s3 + $0xf0] sm:$0xff] }
  0x70   : > { %705 = vmatpush1.bf16.msra.mxu1 %v704_v62  ;;  %v334_v27 = vld [vmem:[%s1224_s3 + $0x2e0] sm:$0xff]  ;;  %v778_v28 = vpack.c.bf16 %v337_v21, %v335_v20  ;;  %v336_v29 = vld [vmem:[%s1224_s3 + $0x2f0] sm:$0xff]  ;;  %v275_v30 = vld [vmem:[%s1224_s3 + $0x108] sm:$0xff]  ;;  %v716_v34 = vpack.c.bf16 %v272_v26, %v270_v25 }
  0x71   : > { %769 = vmatpush1.bf16.msra.mxu0 %v768_v63  ;;  %707 = vmatprep.subr.bf16.mxu1 %v706_v0  ;;  %v277_v31 = vld [vmem:[%s1224_s3 + $0x118] sm:$0xff]  ;;  %v339_v32 = vld [vmem:[%s1224_s3 + $0x308] sm:$0xff]  ;;  %v780_v35 = vpack.c.bf16 %v336_v29, %v334_v27  ;;  %v274_v37 = vld [vmem:[%s1224_s3 + $0x100] sm:$0xff] }
  0x72   : > { %771 = vmatprep.subr.bf16.mxu0 %v770_v4  ;;  %v341_v33 = vld [vmem:[%s1224_s3 + $0x318] sm:$0xff]  ;;  %v718_v36 = vpack.c.bf16 %v277_v31, %v275_v30  ;;  %v276_v38 = vld [vmem:[%s1224_s3 + $0x110] sm:$0xff]  ;;  %v338_v39 = vld [vmem:[%s1224_s3 + $0x300] sm:$0xff] }
  0x73   : > { %v782_v40 = vpack.c.bf16 %v341_v33, %v339_v32  ;;  %v340_v41 = vld [vmem:[%s1224_s3 + $0x310] sm:$0xff]  ;;  %v279_v42 = vld [vmem:[%s1224_s3 + $0x128] sm:$0xff]  ;;  %v281_v43 = vld [vmem:[%s1224_s3 + $0x138] sm:$0xff]  ;;  %v720_v46 = vpack.c.bf16 %v276_v38, %v274_v37 }
  0x74   : > { %709 = vmatpush1.bf16.msra.mxu1 %v708_v10  ;;  %v343_v44 = vld [vmem:[%s1224_s3 + $0x328] sm:$0xff]  ;;  %v345_v45 = vld [vmem:[%s1224_s3 + $0x338] sm:$0xff]  ;;  %v784_v47 = vpack.c.bf16 %v340_v41, %v338_v39  ;;  %v722_v48 = vpack.c.bf16 %v281_v43, %v279_v42  ;;  %v278_v49 = vld [vmem:[%s1224_s3 + $0x120] sm:$0xff] }
  0x75   : > { %773 = vmatpush1.bf16.msra.mxu0 %v772_v11  ;;  %711 = vmatprep.subr.bf16.mxu1 %v710_v12  ;;  %v280_v50 = vld [vmem:[%s1224_s3 + $0x130] sm:$0xff]  ;;  %v342_v51 = vld [vmem:[%s1224_s3 + $0x320] sm:$0xff]  ;;  %v786_v52 = vpack.c.bf16 %v345_v45, %v343_v44  ;;  %v283_v54 = vld [vmem:[%s1224_s3 + $0x148] sm:$0xff] }
  0x76   : > { %775 = vmatprep.subr.bf16.mxu0 %v774_v16  ;;  %v344_v53 = vld [vmem:[%s1224_s3 + $0x330] sm:$0xff]  ;;  %v285_v55 = vld [vmem:[%s1224_s3 + $0x158] sm:$0xff]  ;;  %v347_v56 = vld [vmem:[%s1224_s3 + $0x348] sm:$0xff]  ;;  %v724_v58 = vpack.c.bf16 %v280_v50, %v278_v49 }
  0x77   : > { %v349_v57 = vld [vmem:[%s1224_s3 + $0x358] sm:$0xff]  ;;  %v788_v59 = vpack.c.bf16 %v344_v53, %v342_v51  ;;  %v726_v60 = vpack.c.bf16 %v285_v55, %v283_v54  ;;  %v282_v61 = vld [vmem:[%s1224_s3 + $0x140] sm:$0xff]  ;;  %v284_v62 = vld [vmem:[%s1224_s3 + $0x150] sm:$0xff] }
  0x78   : > { %713 = vmatpush1.bf16.msra.mxu1 %v712_v22  ;;  %v346_v63 = vld [vmem:[%s1224_s3 + $0x340] sm:$0xff]  ;;  %v790_v0 = vpack.c.bf16 %v349_v57, %v347_v56  ;;  %v348_v1 = vld [vmem:[%s1224_s3 + $0x350] sm:$0xff]  ;;  %v287_v2 = vld [vmem:[%s1224_s3 + $0x168] sm:$0xff]  ;;  %v728_v6 = vpack.c.bf16 %v284_v62, %v282_v61 }
  0x79   : > { %777 = vmatpush1.bf16.msra.mxu0 %v776_v23  ;;  %715 = vmatprep.subr.bf16.mxu1 %v714_v24  ;;  %v289_v3 = vld [vmem:[%s1224_s3 + $0x178] sm:$0xff]  ;;  %v351_v4 = vld [vmem:[%s1224_s3 + $0x368] sm:$0xff]  ;;  %v286_v7 = vld [vmem:[%s1224_s3 + $0x160] sm:$0xff]  ;;  %v792_v8 = vpack.c.bf16 %v348_v1, %v346_v63 }
  0x7a   : > { %779 = vmatprep.subr.bf16.mxu0 %v778_v28  ;;  %v353_v5 = vld [vmem:[%s1224_s3 + $0x378] sm:$0xff]  ;;  %v730_v9 = vpack.c.bf16 %v289_v3, %v287_v2  ;;  %v288_v10 = vld [vmem:[%s1224_s3 + $0x170] sm:$0xff]  ;;  %v350_v11 = vld [vmem:[%s1224_s3 + $0x360] sm:$0xff] }
  0x7b   : > { %v352_v12 = vld [vmem:[%s1224_s3 + $0x370] sm:$0xff]  ;;  %v794_v13 = vpack.c.bf16 %v353_v5, %v351_v4  ;;  %v291_v14 = vld [vmem:[%s1224_s3 + $0x188] sm:$0xff]  ;;  %v293_v15 = vld [vmem:[%s1224_s3 + $0x198] sm:$0xff]  ;;  %v732_v20 = vpack.c.bf16 %v288_v10, %v286_v7 }
  0x7c   : > { %717 = vmatpush1.bf16.msra.mxu1 %v716_v34  ;;  %v235_v16 = vld [vmem:[#allocation3 + $0x8] sm:$0xff]  ;;  %v357_v18 = vld [vmem:[%s1224_s3 + $0x398] sm:$0xff]  ;;  %v796_v21 = vpack.c.bf16 %v352_v12, %v350_v11  ;;  %v734_v22 = vpack.c.bf16 %v293_v15, %v291_v14  ;;  %v290_v23 = vld [vmem:[%s1224_s3 + $0x180] sm:$0xff] }
  0x7d   : > { %781 = vmatpush1.bf16.msra.mxu0 %v780_v35  ;;  %719 = vmatprep.subr.bf16.mxu1 %v718_v36  ;;  %v355_v17 = vld [vmem:[%s1224_s3 + $0x388] sm:$0xff]  ;;  %v237_v19 = vld [vmem:[#allocation3 + $0x18] sm:$0xff]  ;;  %v292_v24 = vld [vmem:[%s1224_s3 + $0x190] sm:$0xff] }
  0x7e   : > { %783 = vmatprep.subr.bf16.mxu0 %v782_v40  ;;  %434 = vmatprep.mubr.f32.mxu1 %v235_v16  ;;  %v354_v25 = vld [vmem:[%s1224_s3 + $0x380] sm:$0xff]  ;;  %v798_v26 = vpack.c.bf16 %v357_v18, %v355_v17  ;;  %v356_v27 = vld [vmem:[%s1224_s3 + $0x390] sm:$0xff]  ;;  %v295_v28 = vld [vmem:[%s1224_s3 + $0x1a8] sm:$0xff]  ;;  %v736_v32 = vpack.c.bf16 %v292_v24, %v290_v23 }
  0x7f   : > { %511 = vmatprep.mubr.f32.mxu0 %v237_v19  ;;  %v297_v29 = vld [vmem:[%s1224_s3 + $0x1b8] sm:$0xff]  ;;  %v359_v30 = vld [vmem:[%s1224_s3 + $0x3a8] sm:$0xff]  ;;  %v800_v33 = vpack.c.bf16 %v356_v27, %v354_v25  ;;  %v294_v35 = vld [vmem:[%s1224_s3 + $0x1a0] sm:$0xff] }
  0x80   : > { %721 = vmatpush1.bf16.msra.mxu1 %v720_v46  ;;  %v361_v31 = vld [vmem:[%s1224_s3 + $0x3b8] sm:$0xff]  ;;  %v738_v34 = vpack.c.bf16 %v297_v29, %v295_v28  ;;  %v296_v36 = vld [vmem:[%s1224_s3 + $0x1b0] sm:$0xff]  ;;  %v358_v37 = vld [vmem:[%s1224_s3 + $0x3a0] sm:$0xff] }
  0x81   : > { %785 = vmatpush1.bf16.msra.mxu0 %v784_v47  ;;  %723 = vmatprep.subr.bf16.mxu1 %v722_v48  ;;  %v802_v38 = vpack.c.bf16 %v361_v31, %v359_v30  ;;  %v360_v39 = vld [vmem:[%s1224_s3 + $0x3b0] sm:$0xff]  ;;  %v299_v40 = vld [vmem:[%s1224_s3 + $0x1c8] sm:$0xff]  ;;  %v301_v41 = vld [vmem:[%s1224_s3 + $0x1d8] sm:$0xff]  ;;  %v740_v44 = vpack.c.bf16 %v296_v36, %v294_v35 }
  0x82   : > { %787 = vmatprep.subr.bf16.mxu0 %v786_v52  ;;  %v363_v42 = vld [vmem:[%s1224_s3 + $0x3c8] sm:$0xff]  ;;  %v365_v43 = vld [vmem:[%s1224_s3 + $0x3d8] sm:$0xff]  ;;  %v804_v45 = vpack.c.bf16 %v360_v39, %v358_v37  ;;  %v742_v46 = vpack.c.bf16 %v301_v41, %v299_v40  ;;  %v298_v47 = vld [vmem:[%s1224_s3 + $0x1c0] sm:$0xff] }
  0x83   : > { %v300_v48 = vld [vmem:[%s1224_s3 + $0x1d0] sm:$0xff]  ;;  %v362_v49 = vld [vmem:[%s1224_s3 + $0x3c0] sm:$0xff]  ;;  %v806_v50 = vpack.c.bf16 %v365_v43, %v363_v42  ;;  %v303_v52 = vld [vmem:[%s1224_s3 + $0x1e8] sm:$0xff] }
  0x84   : > { %725 = vmatpush1.bf16.msra.mxu1 %v724_v58  ;;  %v364_v51 = vld [vmem:[%s1224_s3 + $0x3d0] sm:$0xff]  ;;  %v305_v53 = vld [vmem:[%s1224_s3 + $0x1f8] sm:$0xff]  ;;  %v367_v54 = vld [vmem:[%s1224_s3 + $0x3e8] sm:$0xff]  ;;  %v744_v56 = vpack.c.bf16 %v300_v48, %v298_v47 }
  0x85   : > { %789 = vmatpush1.bf16.msra.mxu0 %v788_v59  ;;  %727 = vmatprep.subr.bf16.mxu1 %v726_v60  ;;  %v369_v55 = vld [vmem:[%s1224_s3 + $0x3f8] sm:$0xff]  ;;  %v808_v57 = vpack.c.bf16 %v364_v51, %v362_v49  ;;  %v746_v58 = vpack.c.bf16 %v305_v53, %v303_v52  ;;  %v302_v59 = vld [vmem:[%s1224_s3 + $0x1e0] sm:$0xff]  ;;  %v304_v60 = vld [vmem:[%s1224_s3 + $0x1f0] sm:$0xff] }
  0x86   : > { %791 = vmatprep.subr.bf16.mxu0 %v790_v0  ;;  %v810_v61 = vpack.c.bf16 %v369_v55, %v367_v54  ;;  %v366_v62 = vld [vmem:[%s1224_s3 + $0x3e0] sm:$0xff]  ;;  %v368_v63 = vld [vmem:[%s1224_s3 + $0x3f0] sm:$0xff]  ;;  %v748_v0 = vpack.c.bf16 %v304_v60, %v302_v59  ;;  %v239_v4 = vld [vmem:[#allocation3 + $0x28] sm:$0xff] }
  0x87   : > { %v812_v1 = vpack.c.bf16 %v368_v63, %v366_v62  ;;  %v234_v2 = vld [vmem:[#allocation3] sm:$0xff]  ;;  %v236_v3 = vld [vmem:[#allocation3 + $0x10] sm:$0xff]  ;;  %v241_v5 = vld [vmem:[#allocation3 + $0x38] sm:$0xff] }
  0x88   : > { %729 = vmatpush1.bf16.msra.mxu1 %v728_v6  ;;  %v238_v6 = vld [vmem:[#allocation3 + $0x20] sm:$0xff]  ;;  %v240_v7 = vld [vmem:[#allocation3 + $0x30] sm:$0xff] }
  0x89   : > { %793 = vmatpush1.bf16.msra.mxu0 %v792_v8  ;;  %731 = vmatprep.subr.bf16.mxu1 %v730_v9 }
  0x8a   : > { %795 = vmatprep.subr.bf16.mxu0 %v794_v13 }
  0x8c   : > { %733 = vmatpush1.bf16.msra.mxu1 %v732_v20 }
  0x8d   : > { %797 = vmatpush1.bf16.msra.mxu0 %v796_v21  ;;  %735 = vmatprep.subr.bf16.mxu1 %v734_v22 }
  0x8e   : > { %799 = vmatprep.subr.bf16.mxu0 %v798_v26 }
  0x90   : > { %737 = vmatpush1.bf16.msra.mxu1 %v736_v32 }
  0x91   : > { %801 = vmatpush1.bf16.msra.mxu0 %v800_v33  ;;  %739 = vmatprep.subr.bf16.mxu1 %v738_v34 }
  0x92   : > { %803 = vmatprep.subr.bf16.mxu0 %v802_v38 }
  0x94   : > { %741 = vmatpush1.bf16.msra.mxu1 %v740_v44 }
  0x95   : > { %805 = vmatpush1.bf16.msra.mxu0 %v804_v45  ;;  %743 = vmatprep.subr.bf16.mxu1 %v742_v46 }
  0x96   : > { %807 = vmatprep.subr.bf16.mxu0 %v806_v50 }
  0x98   : > { %745 = vmatpush1.bf16.msra.mxu1 %v744_v56 }
  0x99   : > { %809 = vmatpush1.bf16.msra.mxu0 %v808_v57  ;;  %747 = vmatprep.subr.bf16.mxu1 %v746_v58 }
  0x9a   : > { %811 = vmatprep.subr.bf16.mxu0 %v810_v61 }
  0x9c   : > { %749 = vmatpush1.bf16.msra.mxu1 %v748_v0 }
  0x9d   : > { %813 = vmatpush1.bf16.msra.mxu0 %v812_v1 }
  0x9f   : > { %435 = vmatmul.mubr.f32.vlgmr.msra.gmra.mrb[0].mxu1 %v234_v2 }
  0xa0   : > { %512 = vmatmul.mubr.f32.vlgmr.msra.gmra.mrb[0].mxu0 %v236_v3  ;;  %440 = vmatprep.mubr.f32.mxu1 %v239_v4 }
  0xa1   : > { %517 = vmatprep.mubr.f32.mxu0 %v241_v5 }
  0xa3   : > { %441 = vmatmul.mubr.f32.gmra.mrb[2].mxu1 %v238_v6 }
  0xa4   : > { %518 = vmatmul.mubr.f32.gmra.mrb[2].mxu0 %v240_v7 }
 0x172   : > { %v436_v8 = vpop.f32.mrb[0].mxu1 }
 0x173   : > { %v513_v9 = vpop.f32.mrb[0].mxu0  ;;  %v438_v10 = vpop.f32.mrb[1].mxu1 }
 0x174   : > { %v514_v11 = vadd.f32 %v513_v9, %v436_v8  ;;  %v515_v12 = vpop.f32.mrb[1].mxu0 }
 0x175   : > { %v516_v13 = vadd.f32 %v515_v12, %v438_v10 }
 0x176   : > { %539 = vst [vmem:[%s215_s19] sm:$0xff] %v514_v11  ;;  %v442_v14 = vpop.f32.mrb[2].mxu1 }
 0x177   : > { %540 = vst [vmem:[%s215_s19 + $0x8] sm:$0xff] %v516_v13  ;;  %v519_v15 = vpop.f32.mrb[2].mxu0  ;;  %v444_v16 = vpop.f32.mrb[3].mxu1 }
 0x178   : > { %v520_v17 = vadd.f32 %v519_v15, %v442_v14  ;;  %v521_v18 = vpop.f32.mrb[3].mxu0 }
 0x179   : > { %v522_v19 = vadd.f32 %v521_v18, %v444_v16 }
 0x17a   : > { %541 = vst [vmem:[%s215_s19 + $0x10] sm:$0xff] %v520_v17 }
 0x17b   : > { %542 = vst [vmem:[%s215_s19 + $0x18] sm:$0xff] %v522_v19 }
 0x17c   : > { %970 = shalt.err (!%p967_p6)
}
 0x17d   : > { %s971_s24 = scalar_lea.hbm %s1365_s8, 512  ;;  %s975_s30 = scalar_lea.hbm %s1415_s2, 3072 }
 0x17e   : > { %p972_p12 = scmp.ne.s32.totalorder %s1365_s8, %s971_s24  ;;  %p976_p10 = scmp.lt.u32.totalorder %s1365_s8, %s1415_s2 }
 0x17f   : > { %p977_p1 = scmp.lt.u32.totalorder %s975_s30, %s971_s24  ;;  %p979_p9 = scmp.lt.u32.totalorder %s971_s24, %s1365_s8 }
 0x180   : > { %p973_p2 = pnand %p972_p12, %p1434_p11 }
 0x181   : > { %p978_p8 = por %p977_p1, %p976_p10 }
 0x182   : > { %p974_p7 = pneg %p973_p2 }
 0x183   : > { %p980_p4 = por %p979_p9, %p978_p8 }
 0x185   : > { %p981_p13 = pnand %p980_p4, %p974_p7 }
 0x187   : > { %984 = shalt.err (!%p981_p13)
}
 0x188   : > { %s1053_s17 = smov 256   ;;  %s1054_s19 = smov 1536  }
 0x189   : > { %s1055_s26 = smov 16  }
 0x18a   : > { %824 = dma.vmem_to_hbm [thread:$0]  (%p1434_p11), %s1360_s22, 512, %s1365_s8, %s544_s12, %s1053_s17, %s1054_s19, %s1055_s26  }
 0x18b PF: > { %p841_p0 = scmp.ge.s32.totalorder %s1043_s14, 2  ;;  %s575_s25 = sand.u32 1, %s1023_s9  }
 0x18c   : > { %p1435_p5 = scmp.ne.s32.totalorder %s1426_s21, 0  ;;  %s576_s6 = scalar_lea.sflag [#allocation5], %s575_s25 }
 0x18e   : > { %p835_p3 = pnand %p841_p0, %p1435_p5 }
 0x190   : > { %1018 = dma.done.wait (!%p835_p3), %s576_s6, 512  }
 0x191   : > { %1020 = vsyncadd (!%p835_p3), %s576_s6, 4294966784  ;;  %s19_s14 = sadd.s32 1, %s1043_s14   ;;  %s1436_s9 = smov %s1027_s10 }
 0x192   : > { %p16_p6 = scmp.ge.s32.totalorder %s19_s14, 8   ;;  %s1437_s10 = smov %s1031_s11 }
 0x193   : > { %s1438_s11 = smov %s1181_s7  ;;  %s1439_s12 = smov %s1039_s13 }
 0x194   : > { %s1440_s13 = smov %s1442_s27  ;;  %18 = sbr.rel (!%p16_p6) target bundleno = 7 (0x7), region = 87 }
 0x19b   :  { %581 = vsyncpa [#allocation4], 1 }
 0x19c   :  { %583 = vsyncpa [#allocation4 + $0x1], 1 }
 0x19d   :  { %584 = vsyncpa [#allocation7], 1 }
 0x19e   :  { %586 = vsyncpa [#allocation7 + $0x1], 1 }
 0x19f   :  { %587 = vsyncpa [#allocation5], 1 }
 0x1a0   :  { %589 = vsyncpa [#allocation5 + $0x1], 1 }

</bundles_post_ra>
